<compile_context>
chip_gen: v6e
topology: v6e:2x2x1
jax: 0.10.0
libtpu: 0.0.40
codegen_flags: <defaults>
</compile_context>

<pallas_src>
import jax
import jax.numpy as jnp
from jax.experimental import pallas as pl
from jax.experimental.pallas import tpu as pltpu

_LANE = 1024                    # lane-dense minor dim (multiple of 128)
_MAX_TILE_ROWS = 512            # 512 x 1024 x 4B = 2 MiB f32 streaming tile
_FUSED_VMEM_BUDGET = 8 << 20    # conservative x+out+f32-temp budget (all gens)


def _cdiv(a, b):
    return -(-a // b)


def _round_up(a, b):
    return _cdiv(a, b) * b


# ---------------------------------------------------------------------------
# Fused fast path: whole tensor in one VMEM block, 2N HBM traffic.
# ---------------------------------------------------------------------------
def _fused_softmax_kernel(x_ref, o_ref):
    ex = jnp.exp(x_ref[...].astype(jnp.float32))
    denom = jnp.sum(ex)                         # global scalar (single block)
    o_ref[...] = (ex / denom).astype(o_ref.dtype)


# ---------------------------------------------------------------------------
# Streaming two-pass path for tensors that do not fit a single VMEM block.
# ---------------------------------------------------------------------------
def _partial_sum_kernel(x_ref, psum_ref):
    # Per-tile partial sums of exp(x), reduced only over the sublane (row)
    # axis: mostly elementwise VPU vreg accumulation plus one tiny final
    # cross-sublane reduce.  No per-row cross-lane XLU reduce, no broadcast.
    ex = jnp.exp(x_ref[...].astype(jnp.float32))
    psum_ref[...] = jnp.sum(ex, axis=0, keepdims=True)[None]


def _scale_kernel(denom_ref, x_ref, o_ref):
    # denom_ref: (1,) f32 in SMEM = sum(exp(x)) over the whole tensor.
    ex = jnp.exp(x_ref[...].astype(jnp.float32))
    inv = 1.0 / denom_ref[0]                    # exact reciprocal, once/tile
    o_ref[...] = (ex * inv).astype(o_ref.dtype)


def _softmax_global_impl(x: jax.Array) -> jax.Array:
    orig_shape = x.shape
    orig_dtype = x.dtype
    total = x.size
    itemsize = jnp.dtype(orig_dtype).itemsize

    # ---- fused single-block fast path ------------------------------------
    # Pick a lane-dense 2-D view (free row-major reshape) and estimate VMEM:
    # x + out + f32 temp; a (1, N) fallback layout wastes 8x on sublanes.
    if total % 128 == 0:
        lane = 128
        while lane < _LANE and total % (lane * 2) == 0:
            lane *= 2
        fused_shape = (total // lane, lane)
        layout_factor = 1
    else:
        fused_shape = (1, total)
        layout_factor = 8
    fused_bytes = total * (2 * itemsize + 4) * layout_factor

    if fused_bytes <= _FUSED_VMEM_BUDGET:
        x2d = x.reshape(fused_shape)
        out = pl.pallas_call(
            _fused_softmax_kernel,
            out_shape=jax.ShapeDtypeStruct(fused_shape, orig_dtype),
            cost_estimate=pl.CostEstimate(
                flops=2 * total,
                transcendentals=total,
                bytes_accessed=2 * total * itemsize),
        )(x2d)
        return out.reshape(orig_shape)

    # ---- streaming two-pass path ------------------------------------------
    lane = _LANE
    rows = _round_up(_cdiv(total, lane), 8)          # sublane-aligned rows
    if rows <= _MAX_TILE_ROWS:
        tile_rows, num_tiles = rows, 1
    else:
        num_tiles = _cdiv(rows, _MAX_TILE_ROWS)
        if num_tiles % 2:
            num_tiles += 1        # even count: both v7x TensorCores stay busy
        tile_rows = _round_up(_cdiv(rows, num_tiles), 8)
        rows = num_tiles * tile_rows
    padded = rows * lane

    xf = x.reshape(-1)
    if padded != total:
        # exp(-inf) == 0: padding contributes nothing to the global sum.
        # TODO(synk): mask the tail tile in-kernel (scalar-prefetch `total`)
        # to avoid this pad + trailing unpad copy for ragged sizes.
        xf = jnp.pad(xf, (0, padded - total), constant_values=-jnp.inf)
    x2d = xf.reshape(rows, lane)

    parallel = pltpu.CompilerParams(dimension_semantics=("parallel",))

    # pass 1: per-tile lane-wise partial sums of exp(x)
    partials = pl.pallas_call(
        _partial_sum_kernel,
        out_shape=jax.ShapeDtypeStruct((num_tiles, 1, lane), jnp.float32),
        grid=(num_tiles,),
        in_specs=[pl.BlockSpec((tile_rows, lane), lambda i: (i, 0))],
        out_specs=pl.BlockSpec((1, 1, lane), lambda i: (i, 0, 0)),
        compiler_params=parallel,
        cost_estimate=pl.CostEstimate(
            flops=padded,
            transcendentals=padded,
            bytes_accessed=padded * itemsize + num_tiles * lane * 4),
    )(x2d)

    denom = jnp.sum(partials).astype(jnp.float32).reshape((1,))

    # pass 2: scale exp(x) by the global denominator (reciprocal in-kernel)
    out2d = pl.pallas_call(
        _scale_kernel,
        out_shape=jax.ShapeDtypeStruct((rows, lane), orig_dtype),
        grid=(num_tiles,),
        in_specs=[pl.BlockSpec(memory_space=pltpu.MemorySpace.SMEM),
                  pl.BlockSpec((tile_rows, lane), lambda i: (i, 0))],
        out_specs=pl.BlockSpec((tile_rows, lane), lambda i: (i, 0)),
        compiler_params=parallel,
        cost_estimate=pl.CostEstimate(
            flops=2 * padded,
            transcendentals=padded,
            bytes_accessed=2 * padded * itemsize),
    )(denom, x2d)

    out = out2d.reshape(-1)
    if padded != total:
        out = out[:total]
    return out.reshape(orig_shape)


softmax_global = jax.jit(_softmax_global_impl)


if __name__ == "__main__":
    def ref_softmax(a):
        e = jnp.exp(a)
        return e / jnp.sum(e)

    key = jax.random.PRNGKey(0)
    k1, k2, k3, k4 = jax.random.split(key, 4)

    # Small shape consistent with the module's forward (fused fast path).
    x = jax.random.normal(k1, (8, 32), dtype=jnp.float32)
    out = jax.block_until_ready(softmax_global(x))
    assert out.shape == x.shape and out.dtype == x.dtype
    assert jnp.allclose(out, ref_softmax(x), rtol=1e-5, atol=1e-8), "mismatch (small)"
    assert jnp.allclose(jnp.sum(out), 1.0, atol=1e-5)

    # Medium shape, still single fused VMEM block (2 MiB f32).
    x2 = jax.random.normal(k2, (512, 1024), dtype=jnp.float32)
    out2 = jax.block_until_ready(softmax_global(x2))
    assert jnp.allclose(out2, ref_softmax(x2), rtol=1e-3, atol=1e-9), "mismatch (fused)"
    assert jnp.allclose(jnp.sum(out2), 1.0, atol=1e-3)

    # Large aligned shape: streaming two-pass path, even tile count, no pad.
    x3 = jax.random.normal(k3, (1024, 2048), dtype=jnp.float32)
    out3 = jax.block_until_ready(softmax_global(x3))
    assert jnp.allclose(out3, ref_softmax(x3), rtol=1e-3, atol=1e-9), "mismatch (stream)"
    assert jnp.allclose(jnp.sum(out3), 1.0, atol=1e-3)

    # Ragged shape: streaming path with -inf tail padding.
    x4 = jax.random.normal(k4, (1030, 771), dtype=jnp.float32)
    out4 = jax.block_until_ready(softmax_global(x4))
    assert out4.shape == x4.shape
    assert jnp.allclose(out4, ref_softmax(x4), rtol=1e-3, atol=1e-9), "mismatch (ragged)"
    assert jnp.allclose(jnp.sum(out4), 1.0, atol=1e-3)

    print("KERNEL_OK")
</pallas_src>

<mosaic_0001>
module attributes {stable_mosaic.version = 11 : i64} {
  func.func @_fused_softmax_kernel(%arg0: memref<1x256xf32, #tpu.memory_space<vmem>>, %arg1: memref<1x256xf32, #tpu.memory_space<vmem>>) attributes {dimension_semantics = [], scalar_prefetch = 0 : i64, scratch_operands = 0 : i64, tpu.core_type = #tpu.core_type<tc>} {
    %c0 = arith.constant 0 : index
    %c0_0 = arith.constant 0 : index
    %0 = vector.load %arg0[%c0, %c0_0] : memref<1x256xf32, #tpu.memory_space<vmem>>, vector<1x256xf32>
    %1 = math.exp %0 : vector<1x256xf32>
    %2 = vector.shape_cast %1 : vector<1x256xf32> to vector<1x1x256xf32>
    %cst = arith.constant dense<0.000000e+00> : vector<1xf32>
    %3 = vector.multi_reduction <add>, %2, %cst [1, 2] : vector<1x1x256xf32> to vector<1xf32>
    %4 = vector.shape_cast %3 : vector<1xf32> to vector<1x1x1xf32>
    %5 = vector.extract %4[0, 0, 0] : f32 from vector<1x1x1xf32>
    %6 = vector.broadcast %5 : f32 to vector<1x256xf32>
    %7 = arith.divf %1, %6 : vector<1x256xf32>
    %c0_1 = arith.constant 0 : index
    %c0_2 = arith.constant 0 : index
    %8 = vector.load %arg1[%c0_1, %c0_2] : memref<1x256xf32, #tpu.memory_space<vmem>>, vector<1x256xf32>
    tpu.vector_store %arg1[%c0_1, %c0_2], %7 {strides = array<i32>} : memref<1x256xf32, #tpu.memory_space<vmem>>, vector<1x256xf32>,
    return
  }
}

</mosaic_0001>

<bundles_post_ra>
// kernel: _softmax_global_impl.1
= control target key start
LH: loop header
LB: loop body
LE: loop exit
PB: predicated region body
PF: predicated region fallthrough
CT: control target
= control target key end

     0   :  { %v12_v2 = vlaneseq  ;;  %vm22_vm0 = vcmask 1040384   ;;  %s69_s0 = inlined_call_operand.vmem [shape: f32[1,256], index: 0, kind: input, shape index: {}]   ;;  %s70_s1 = inlined_call_operand.vmem [shape: f32[1,256], index: 1, kind: output, shape index: {}]  }
   0x1   :  { %v8_v0 = vld [vmem:[%s69_s0] sm:$0x3] }
   0x2   :  { %v9_v1 = vmul.f32 1.442695, %v8_v0  ;;  %v13_v3 = vshrl.u32 %v12_v2, 7  ;;  %vm40_vm1 = vcmp.lt.s32.totalorder %v12_v2, 256 }
   0x4   :  { %49 = vpow2.f32 %v9_v1  ;;  %v14_v4 = vsub.s32 0, %v13_v3  ;;  %v18_v5 = vsub.s32 1, %v13_v3 }
  0x11   :  { %v50_v6 = vpop.eup %49 }
  0x12   :  { %v15_v7 = vrot.slane %v50_v6, %v14_v4  ;;  %v19_v8 = vrot.slane %v50_v6, %v18_v5 }
  0x14   :  { %v23_v9 = vsel %vm22_vm0, %v15_v7, 0.0  ;;  %v24_v10 = vsel %vm22_vm0, %v19_v8, 0.0 }
  0x15   :  { %v25_v11 = vadd.f32 %v24_v10, %v23_v9 }
  0x17   :  { %26 = vadd.xlane.f32.xlu0 %v25_v11 }
  0xa0   :  { %v27_v12 = vpop.xlane.xlu0 %26 }
  0xa1   :  { %v28_v13 = vrot.slane %v27_v12, 4 }
  0xa3   :  { %v29_v14 = vadd.f32 %v28_v13, %v27_v12 }
  0xa5   :  { %v30_v15 = vrot.slane %v29_v14, 2 }
  0xa7   :  { %v31_v16 = vadd.f32 %v30_v15, %v29_v14 }
  0xa9   :  { %v32_v17 = vrot.slane %v31_v16, 1 }
  0xab   :  { %v33_v18 = vadd.f32 %v32_v17, %v31_v16 }
  0xad   :  { %47 = vpush %v33_v18 }
  0xde   :  { %s48_s0 = spop %47 }
  0xdf   :  { %v35_v19 = vstv %s48_s0 }
  0xe0   :  { %51 = vrcp.f32 %v35_v19 }
  0xed   :  { %v52_v20 = vpop.eup %51 }
  0xee   :  { %v37_v21 = vmul.f32 %v52_v20, %v50_v6 }
  0xf0   :  { %42 = vst.msk [vmem:[%s70_s1] sm:$0x3] %vm40_vm1, %v37_v21 }

</bundles_post_ra>
